<compile_context>
chip_gen: v5e
topology: v5e:2x2
jax: 0.10.0
libtpu: 0.0.40
codegen_flags: <defaults>
</compile_context>

<pallas_src>
import jax
import jax.numpy as jnp
from jax.experimental import pallas as pl
from jax.experimental.pallas import tpu as pltpu

LN_EPS = 1e-5


def _layernorm(x, gamma, beta):
    # PyTorch LayerNorm: biased variance, eps inside sqrt.
    mean = jnp.mean(x, axis=-1, keepdims=True)
    var = jnp.mean((x - mean) ** 2, axis=-1, keepdims=True)
    inv = jax.lax.rsqrt(var + LN_EPS)
    return (x - mean) * inv * gamma + beta


def termination_decoder_kernel(
    feat_ref,        # (tm, K*D)  lane-dense row tile (slots flattened)
    w1_ref,          # (K*D, H)   slot-sum folded into the weight
    g1_ref, b1_ref,  # (1, H)
    w2_ref,          # (H, H)
    g2_ref, b2_ref,  # (1, H)
    w3t_ref,         # (1, H)     head weight, transposed
    b3_ref,          # (1, 1)     head bias, SMEM scalar
    out_ref,         # (1, 1, tm) lane-dense output slab
):
    x = feat_ref[...]                                                   # (tm, K*D)

    # stage 1: (slot-sum + Linear, no bias) -> LayerNorm -> ReLU
    h = jnp.dot(x, w1_ref[...], preferred_element_type=jnp.float32)    # (tm, H)
    h = _layernorm(h, g1_ref[...], b1_ref[...])
    h = jnp.maximum(h, 0.0)

    # stage 2: Linear(no bias) -> LayerNorm -> ReLU
    h = jnp.dot(h, w2_ref[...], preferred_element_type=jnp.float32)    # (tm, H)
    h = _layernorm(h, g2_ref[...], b2_ref[...])
    h = jnp.maximum(h, 0.0)

    # head: contract H of (1,H) with H of (tm,H) -> (1, tm), add scalar bias.
    t = jax.lax.dot_general(
        w3t_ref[...], h,
        dimension_numbers=(((1,), (1,)), ((), ())),
        preferred_element_type=jnp.float32,
    ) + b3_ref[0, 0]
    out_ref[...] = t[None].astype(out_ref.dtype)                       # (1,1,tm)


def _round_up(x, m):
    return (x + m - 1) // m * m


def termination_decoder(feat, params, *, tm=1024):
    """feat: (B, T, K, D) float32.  Returns termination logits (B, T)."""
    B, T, K, D = feat.shape
    KD = K * D
    H = params["w1"].shape[1]
    M = B * T

    # Row tile: clamp to the (8-aligned) problem size; keep multiple of 8.
    # For v7x, a grid length >= 2 lets both TensorCores work; with tm=1024
    # any production-sized M gives many grid steps.
    tm_eff = min(tm, _round_up(M, 8))
    M_pad = _round_up(M, tm_eff)
    grid_m = M_pad // tm_eff

    # Lane-dense input: flatten slots into the lane axis; zero-pad tail rows
    # (LayerNorm of an all-zero row is finite; padded outputs are discarded).
    feat_flat = feat.reshape(M, KD)
    if M_pad != M:
        feat_flat = jnp.pad(feat_flat, ((0, M_pad - M), (0, 0)))

    # Fold the slot-sum into w1:  x.sum(K) @ w1  ==  x.reshape(M, K*D) @ tile(w1, K)
    w1_folded = jnp.concatenate([params["w1"]] * K, axis=0)            # (K*D, H)
    w3t = params["w3"].T                                               # (1, H)

    full = lambda i: (0, 0)  # weights are not tiled

    out = pl.pallas_call(
        termination_decoder_kernel,
        out_shape=jax.ShapeDtypeStruct((grid_m, 1, tm_eff), jnp.float32),
        grid_spec=pltpu.PrefetchScalarGridSpec(
            num_scalar_prefetch=0,
            grid=(grid_m,),
            in_specs=[
                # TODO(synk): add pipeline_mode=pl.Buffered(3) here if a
                # profile still shows exposed feat DMA at large tm.
                pl.BlockSpec((tm_eff, KD), lambda i: (i, 0)),
                pl.BlockSpec((KD, H), full),
                pl.BlockSpec((1, H), full),
                pl.BlockSpec((1, H), full),
                pl.BlockSpec((H, H), full),
                pl.BlockSpec((1, H), full),
                pl.BlockSpec((1, H), full),
                pl.BlockSpec((1, H), full),
                pl.BlockSpec(memory_space=pltpu.MemorySpace.SMEM),     # b3 scalar
            ],
            out_specs=pl.BlockSpec((1, 1, tm_eff), lambda i: (i, 0, 0)),
        ),
        compiler_params=pltpu.CompilerParams(
            dimension_semantics=("parallel",)),
    )(
        feat_flat,
        w1_folded,
        params["g1"], params["b1"],
        params["w2"],
        params["g2"], params["b2"],
        w3t,
        params["b3"],
    )
    return out.reshape(M_pad)[:M].reshape(B, T)


def init_params(key, input_dim, hidden_dim):
    ks = jax.random.split(key, 4)
    scale1 = 1.0 / jnp.sqrt(input_dim)
    scale2 = 1.0 / jnp.sqrt(hidden_dim)
    return {
        # Linear weights stored as (in, out) so the kernel does x @ W.
        "w1": jax.random.uniform(ks[0], (input_dim, hidden_dim), jnp.float32,
                                 -scale1, scale1),
        "g1": jnp.ones((1, hidden_dim), jnp.float32),
        "b1": jnp.zeros((1, hidden_dim), jnp.float32),
        "w2": jax.random.uniform(ks[1], (hidden_dim, hidden_dim), jnp.float32,
                                 -scale2, scale2),
        "g2": jnp.ones((1, hidden_dim), jnp.float32),
        "b2": jnp.zeros((1, hidden_dim), jnp.float32),
        "w3": jax.random.uniform(ks[2], (hidden_dim, 1), jnp.float32,
                                 -scale2, scale2),
        "b3": jax.random.uniform(ks[3], (1, 1), jnp.float32, -scale2, scale2),
    }


def reference(feat, p):
    x = jnp.sum(feat, axis=-2)
    h = x @ p["w1"]
    h = _layernorm(h, p["g1"][0], p["b1"][0])
    h = jnp.maximum(h, 0.0)
    h = h @ p["w2"]
    h = _layernorm(h, p["g2"][0], p["b2"][0])
    h = jnp.maximum(h, 0.0)
    t = h @ p["w3"] + p["b3"][0]
    return jnp.squeeze(t, -1)


if __name__ == "__main__":
    key = jax.random.PRNGKey(0)
    B, T, K, D, H = 2, 8, 4, 32, 32  # batch, seq, slots, input_dim, hidden_dim

    k_feat, k_par = jax.random.split(key)
    feat = jax.random.normal(k_feat, (B, T, K, D), jnp.float32)
    params = init_params(k_par, D, H)

    out = termination_decoder(feat, params)
    out = jax.block_until_ready(out)

    ref = reference(feat, params)
    assert out.shape == (B, T)
    assert jnp.allclose(out, ref, atol=1e-4, rtol=1e-4), (
        f"mismatch: max abs diff {jnp.max(jnp.abs(out - ref))}")
    print("KERNEL_OK")
</pallas_src>

<mosaic_0001>
module attributes {stable_mosaic.version = 11 : i64} {
  func.func @termination_decoder_kernel(%arg0: i32, %arg1: memref<16x128xf32, #tpu.memory_space<vmem>>, %arg2: memref<128x32xf32, #tpu.memory_space<vmem>>, %arg3: memref<1x32xf32, #tpu.memory_space<vmem>>, %arg4: memref<1x32xf32, #tpu.memory_space<vmem>>, %arg5: memref<32x32xf32, #tpu.memory_space<vmem>>, %arg6: memref<1x32xf32, #tpu.memory_space<vmem>>, %arg7: memref<1x32xf32, #tpu.memory_space<vmem>>, %arg8: memref<1x32xf32, #tpu.memory_space<vmem>>, %arg9: memref<1x1xf32, #tpu.memory_space<smem>>, %arg10: memref<1x1x16xf32, #tpu.memory_space<vmem>>) attributes {dimension_semantics = [#tpu.dimension_semantics<parallel>], iteration_bounds = array<i64: 1>, scalar_prefetch = 0 : i64, scratch_operands = 0 : i64, tpu.core_type = #tpu.core_type<tc>, window_params = [{transform_indices = @transform_0, window_bounds = array<i64: 16, 128>}, {pipeline_mode = #tpu.pipeline_mode<synchronous>, transform_indices = @transform_1, window_bounds = array<i64: 128, 32>}, {pipeline_mode = #tpu.pipeline_mode<synchronous>, transform_indices = @transform_2, window_bounds = array<i64: 1, 32>}, {pipeline_mode = #tpu.pipeline_mode<synchronous>, transform_indices = @transform_3, window_bounds = array<i64: 1, 32>}, {pipeline_mode = #tpu.pipeline_mode<synchronous>, transform_indices = @transform_4, window_bounds = array<i64: 32, 32>}, {pipeline_mode = #tpu.pipeline_mode<synchronous>, transform_indices = @transform_5, window_bounds = array<i64: 1, 32>}, {pipeline_mode = #tpu.pipeline_mode<synchronous>, transform_indices = @transform_6, window_bounds = array<i64: 1, 32>}, {pipeline_mode = #tpu.pipeline_mode<synchronous>, transform_indices = @transform_7, window_bounds = array<i64: 1, 32>}, {transform_indices = @transform_8, window_bounds = array<i64: 1, 1>}, {transform_indices = @transform_9, window_bounds = array<i64: 1, 1, 16>}]} {
    %c0 = arith.constant 0 : index
    %c0_0 = arith.constant 0 : index
    %0 = vector.load %arg1[%c0, %c0_0] : memref<16x128xf32, #tpu.memory_space<vmem>>, vector<16x128xf32>
    %c0_1 = arith.constant 0 : index
    %c0_2 = arith.constant 0 : index
    %1 = vector.load %arg2[%c0_1, %c0_2] : memref<128x32xf32, #tpu.memory_space<vmem>>, vector<128x32xf32>
    %cst = arith.constant dense<0.000000e+00> : vector<16x32xf32>
    %2 = tpu.matmul %0, %1, %cst {dimension_numbers = #tpu.dot_dimension_numbers<[1], [0], [0], [1], [0, 0, 1, 1], [], []>} : vector<16x128xf32>, vector<128x32xf32>, vector<16x32xf32> -> vector<16x32xf32>
    %c0_3 = arith.constant 0 : index
    %c0_4 = arith.constant 0 : index
    %3 = vector.load %arg3[%c0_3, %c0_4] : memref<1x32xf32, #tpu.memory_space<vmem>>, vector<1x32xf32>
    %c0_5 = arith.constant 0 : index
    %c0_6 = arith.constant 0 : index
    %4 = vector.load %arg4[%c0_5, %c0_6] : memref<1x32xf32, #tpu.memory_space<vmem>>, vector<1x32xf32>
    %cst_7 = arith.constant dense<0.000000e+00> : vector<16xf32>
    %5 = vector.multi_reduction <add>, %2, %cst_7 [1] : vector<16x32xf32> to vector<16xf32>
    %6 = vector.shape_cast %5 : vector<16xf32> to vector<16x1xf32>
    %cst_8 = arith.constant 3.200000e+01 : f32
    %7 = vector.broadcast %cst_8 : f32 to vector<16x1xf32>
    %8 = arith.divf %6, %7 : vector<16x1xf32>
    %9 = vector.broadcast %8 : vector<16x1xf32> to vector<16x32xf32>
    %10 = arith.subf %2, %9 : vector<16x32xf32>
    %11 = arith.mulf %10, %10 : vector<16x32xf32>
    %cst_9 = arith.constant dense<0.000000e+00> : vector<16xf32>
    %12 = vector.multi_reduction <add>, %11, %cst_9 [1] : vector<16x32xf32> to vector<16xf32>
    %13 = vector.shape_cast %12 : vector<16xf32> to vector<16x1xf32>
    %cst_10 = arith.constant 3.200000e+01 : f32
    %14 = vector.broadcast %cst_10 : f32 to vector<16x1xf32>
    %15 = arith.divf %13, %14 : vector<16x1xf32>
    %cst_11 = arith.constant 9.99999974E-6 : f32
    %16 = vector.broadcast %cst_11 : f32 to vector<16x1xf32>
    %17 = arith.addf %15, %16 : vector<16x1xf32>
    %18 = math.rsqrt %17 : vector<16x1xf32>
    %19 = vector.broadcast %8 : vector<16x1xf32> to vector<16x32xf32>
    %20 = arith.subf %2, %19 : vector<16x32xf32>
    %21 = vector.broadcast %18 : vector<16x1xf32> to vector<16x32xf32>
    %22 = arith.mulf %20, %21 : vector<16x32xf32>
    %23 = vector.broadcast %3 : vector<1x32xf32> to vector<16x32xf32>
    %24 = arith.mulf %22, %23 : vector<16x32xf32>
    %25 = vector.broadcast %4 : vector<1x32xf32> to vector<16x32xf32>
    %26 = arith.addf %24, %25 : vector<16x32xf32>
    %cst_12 = arith.constant 0.000000e+00 : f32
    %27 = vector.broadcast %cst_12 : f32 to vector<16x32xf32>
    %28 = arith.maximumf %26, %27 : vector<16x32xf32>
    %c0_13 = arith.constant 0 : index
    %c0_14 = arith.constant 0 : index
    %29 = vector.load %arg5[%c0_13, %c0_14] : memref<32x32xf32, #tpu.memory_space<vmem>>, vector<32x32xf32>
    %cst_15 = arith.constant dense<0.000000e+00> : vector<16x32xf32>
    %30 = tpu.matmul %28, %29, %cst_15 {dimension_numbers = #tpu.dot_dimension_numbers<[1], [0], [0], [1], [0, 0, 1, 1], [], []>} : vector<16x32xf32>, vector<32x32xf32>, vector<16x32xf32> -> vector<16x32xf32>
    %c0_16 = arith.constant 0 : index
    %c0_17 = arith.constant 0 : index
    %31 = vector.load %arg6[%c0_16, %c0_17] : memref<1x32xf32, #tpu.memory_space<vmem>>, vector<1x32xf32>
    %c0_18 = arith.constant 0 : index
    %c0_19 = arith.constant 0 : index
    %32 = vector.load %arg7[%c0_18, %c0_19] : memref<1x32xf32, #tpu.memory_space<vmem>>, vector<1x32xf32>
    %cst_20 = arith.constant dense<0.000000e+00> : vector<16xf32>
    %33 = vector.multi_reduction <add>, %30, %cst_20 [1] : vector<16x32xf32> to vector<16xf32>
    %34 = vector.shape_cast %33 : vector<16xf32> to vector<16x1xf32>
    %cst_21 = arith.constant 3.200000e+01 : f32
    %35 = vector.broadcast %cst_21 : f32 to vector<16x1xf32>
    %36 = arith.divf %34, %35 : vector<16x1xf32>
    %37 = vector.broadcast %36 : vector<16x1xf32> to vector<16x32xf32>
    %38 = arith.subf %30, %37 : vector<16x32xf32>
    %39 = arith.mulf %38, %38 : vector<16x32xf32>
    %cst_22 = arith.constant dense<0.000000e+00> : vector<16xf32>
    %40 = vector.multi_reduction <add>, %39, %cst_22 [1] : vector<16x32xf32> to vector<16xf32>
    %41 = vector.shape_cast %40 : vector<16xf32> to vector<16x1xf32>
    %cst_23 = arith.constant 3.200000e+01 : f32
    %42 = vector.broadcast %cst_23 : f32 to vector<16x1xf32>
    %43 = arith.divf %41, %42 : vector<16x1xf32>
    %cst_24 = arith.constant 9.99999974E-6 : f32
    %44 = vector.broadcast %cst_24 : f32 to vector<16x1xf32>
    %45 = arith.addf %43, %44 : vector<16x1xf32>
    %46 = math.rsqrt %45 : vector<16x1xf32>
    %47 = vector.broadcast %36 : vector<16x1xf32> to vector<16x32xf32>
    %48 = arith.subf %30, %47 : vector<16x32xf32>
    %49 = vector.broadcast %46 : vector<16x1xf32> to vector<16x32xf32>
    %50 = arith.mulf %48, %49 : vector<16x32xf32>
    %51 = vector.broadcast %31 : vector<1x32xf32> to vector<16x32xf32>
    %52 = arith.mulf %50, %51 : vector<16x32xf32>
    %53 = vector.broadcast %32 : vector<1x32xf32> to vector<16x32xf32>
    %54 = arith.addf %52, %53 : vector<16x32xf32>
    %cst_25 = arith.constant 0.000000e+00 : f32
    %55 = vector.broadcast %cst_25 : f32 to vector<16x32xf32>
    %56 = arith.maximumf %54, %55 : vector<16x32xf32>
    %c0_26 = arith.constant 0 : index
    %c0_27 = arith.constant 0 : index
    %57 = vector.load %arg8[%c0_26, %c0_27] : memref<1x32xf32, #tpu.memory_space<vmem>>, vector<1x32xf32>
    %cst_28 = arith.constant dense<0.000000e+00> : vector<1x16xf32>
    %58 = tpu.matmul %57, %56, %cst_28 {dimension_numbers = #tpu.dot_dimension_numbers<[1], [1], [0], [0], [0, 0, 1, 0], [], []>} : vector<1x32xf32>, vector<16x32xf32>, vector<1x16xf32> -> vector<1x16xf32>
    %c0_29 = arith.constant 0 : index
    %c0_30 = arith.constant 0 : index
    %59 = memref.load %arg9[%c0_29, %c0_30] : memref<1x1xf32, #tpu.memory_space<smem>>
    %60 = vector.broadcast %59 : f32 to vector<1x16xf32>
    %61 = arith.addf %58, %60 : vector<1x16xf32>
    %62 = vector.shape_cast %61 : vector<1x16xf32> to vector<1x1x16xf32>
    %c0_31 = arith.constant 0 : index
    %c0_32 = arith.constant 0 : index
    %c0_33 = arith.constant 0 : index
    %63 = vector.load %arg10[%c0_31, %c0_32, %c0_33] : memref<1x1x16xf32, #tpu.memory_space<vmem>>, vector<1x1x16xf32>
    tpu.vector_store %arg10[%c0_31, %c0_32, %c0_33], %62 {strides = array<i32>} : memref<1x1x16xf32, #tpu.memory_space<vmem>>, vector<1x1x16xf32>,
    return
  }
  func.func @transform_0(%arg0: i32) -> (i32, i32) {
    %c0_i32 = arith.constant 0 : i32
    %c0_i32_0 = arith.constant 0 : i32
    return %arg0, %c0_i32 : i32, i32
  }
  func.func @transform_1(%arg0: i32) -> (i32, i32) {
    %c0_i32 = arith.constant 0 : i32
    %c0_i32_0 = arith.constant 0 : i32
    %c0_i32_1 = arith.constant 0 : i32
    return %c0_i32, %c0_i32_0 : i32, i32
  }
  func.func @transform_2(%arg0: i32) -> (i32, i32) {
    %c0_i32 = arith.constant 0 : i32
    %c0_i32_0 = arith.constant 0 : i32
    %c0_i32_1 = arith.constant 0 : i32
    return %c0_i32, %c0_i32_0 : i32, i32
  }
  func.func @transform_3(%arg0: i32) -> (i32, i32) {
    %c0_i32 = arith.constant 0 : i32
    %c0_i32_0 = arith.constant 0 : i32
    %c0_i32_1 = arith.constant 0 : i32
    return %c0_i32, %c0_i32_0 : i32, i32
  }
  func.func @transform_4(%arg0: i32) -> (i32, i32) {
    %c0_i32 = arith.constant 0 : i32
    %c0_i32_0 = arith.constant 0 : i32
    %c0_i32_1 = arith.constant 0 : i32
    return %c0_i32, %c0_i32_0 : i32, i32
  }
  func.func @transform_5(%arg0: i32) -> (i32, i32) {
    %c0_i32 = arith.constant 0 : i32
    %c0_i32_0 = arith.constant 0 : i32
    %c0_i32_1 = arith.constant 0 : i32
    return %c0_i32, %c0_i32_0 : i32, i32
  }
  func.func @transform_6(%arg0: i32) -> (i32, i32) {
    %c0_i32 = arith.constant 0 : i32
    %c0_i32_0 = arith.constant 0 : i32
    %c0_i32_1 = arith.constant 0 : i32
    return %c0_i32, %c0_i32_0 : i32, i32
  }
  func.func @transform_7(%arg0: i32) -> (i32, i32) {
    %c0_i32 = arith.constant 0 : i32
    %c0_i32_0 = arith.constant 0 : i32
    %c0_i32_1 = arith.constant 0 : i32
    return %c0_i32, %c0_i32_0 : i32, i32
  }
  func.func @transform_8(%arg0: i32) -> (i32, i32) {
    %c0_i32 = arith.constant 0 : i32
    %c0_i32_0 = arith.constant 0 : i32
    %c0_i32_1 = arith.constant 0 : i32
    return %c0_i32, %c0_i32_0 : i32, i32
  }
  func.func @transform_9(%arg0: i32) -> (i32, i32, i32) {
    %c0_i32 = arith.constant 0 : i32
    %c0_i32_0 = arith.constant 0 : i32
    %c0_i32_1 = arith.constant 0 : i32
    return %arg0, %c0_i32, %c0_i32_0 : i32, i32, i32
  }
}

</mosaic_0001>

<bundles_post_ra>
// kernel: tpu_custom_call.1
= control target key start
LH: loop header
LB: loop body
LE: loop exit
PB: predicated region body
PF: predicated region fallthrough
CT: control target
= control target key end

     0   :  { %s507_s0 = inlined_call_operand.vmem [shape: f32[16,128], index: 0, kind: input, shape index: {}]   ;;  %s508_s1 = inlined_call_operand.vmem [shape: f32[128,32], index: 1, kind: input, shape index: {}]   ;;  %s509_s2 = inlined_call_operand.vmem [shape: f32[1,32], index: 2, kind: input, shape index: {}]   ;;  %s510_s3 = inlined_call_operand.vmem [shape: f32[1,32], index: 3, kind: input, shape index: {}]   ;;  %s511_s4 = inlined_call_operand.vmem [shape: f32[32,32], index: 4, kind: input, shape index: {}]   ;;  %s512_s5 = inlined_call_operand.vmem [shape: f32[1,32], index: 5, kind: input, shape index: {}]   ;;  %s513_s6 = inlined_call_operand.vmem [shape: f32[1,32], index: 6, kind: input, shape index: {}]   ;;  %s514_s7 = inlined_call_operand.vmem [shape: f32[1,32], index: 7, kind: input, shape index: {}]   ;;  %s515_s8 = inlined_call_operand.<no memory space> [shape: f32[1,1], index: 8, kind: input, shape index: {}]   ;;  %s516_s9 = inlined_call_operand.hbm [shape: f32[1,1,16], index: 9, kind: output, shape index: {}]  }
   0x1   :  { %v51_v0 = vld [vmem:[%s508_s1 + $0x78] sm:$0xff]  ;;  %v50_v1 = vld [vmem:[%s508_s1 + $0x70] sm:$0xff]  ;;  %v49_v2 = vld [vmem:[%s508_s1 + $0x68] sm:$0xff] }
   0x2   :  { %52 = vmatpush.msra.mxu0 %v51_v0  ;;  %287 = vmatpush.msra.mxu3 %v51_v0  ;;  %v48_v3 = vld [vmem:[%s508_s1 + $0x60] sm:$0xff]  ;;  %v47_v4 = vld [vmem:[%s508_s1 + $0x58] sm:$0xff] }
   0x4   :  { %53 = vmatpush.msra.mxu0 %v50_v1  ;;  %288 = vmatpush.msra.mxu3 %v50_v1 }
   0x6   :  { %54 = vmatpush.msra.mxu0 %v49_v2  ;;  %289 = vmatpush.msra.mxu3 %v49_v2 }
   0x8   :  { %55 = vmatpush.msra.mxu0 %v48_v3  ;;  %290 = vmatpush.msra.mxu3 %v48_v3 }
   0x9   :  { %15 = vsyncpa [#allocation4], 0  ;;  %v46_v5 = vld [vmem:[%s508_s1 + $0x50] sm:$0xff]  ;;  %v45_v6 = vld [vmem:[%s508_s1 + $0x48] sm:$0xff]  ;;  %vm77_vm0 = vcmask 261120   ;;  %v345_v22 = vmov 32.0  }
   0xa   :  { %56 = vmatpush.msra.mxu0 %v47_v4  ;;  %291 = vmatpush.msra.mxu3 %v47_v4  ;;  %v44_v7 = vld [vmem:[%s508_s1 + $0x40] sm:$0xff]  ;;  %v43_v8 = vld [vmem:[%s508_s1 + $0x38] sm:$0xff]  ;;  %v42_v9 = vld [vmem:[%s508_s1 + $0x30] sm:$0xff]  ;;  %309 = vrcp.f32 %v345_v22  ;;  %s346_s16 = smov [#allocation3]   ;;  %s273_s20 = sshll.u32 %s516_s9, 4  ;;  %vm264_vm14 = vcmask 122880   ;;  %s274_s20 = int_to_ptr.hbm [resolvable:$true] %s273_s20 }
   0xb   :  { %v41_v10 = vld [vmem:[%s508_s1 + $0x28] sm:$0xff]  ;;  %v40_v11 = vld [vmem:[%s508_s1 + $0x20] sm:$0xff]  ;;  %v39_v12 = vld [vmem:[%s508_s1 + $0x18] sm:$0xff]  ;;  %s271_s17 = sshll.u32 %s346_s16, 4  ;;  %s272_s17 = int_to_ptr.vmem [resolvable:$true] %s271_s17 }
   0xc   :  { %57 = vmatpush.msra.mxu0 %v46_v5  ;;  %292 = vmatpush.msra.mxu3 %v46_v5  ;;  %v38_v13 = vld [vmem:[%s508_s1 + $0x10] sm:$0xff]  ;;  %v37_v14 = vld [vmem:[%s508_s1 + $0x8] sm:$0xff]  ;;  %v36_v15 = vld [vmem:[%s508_s1] sm:$0xff] }
   0xd   :  { %v34_v16 = vld [vmem:[%s507_s0] sm:$0xff]  ;;  %v35_v17 = vld [vmem:[%s507_s0 + $0x8] sm:$0xff]  ;;  %v144_v39 = vld [vmem:[%s511_s4 + $0x18] sm:$0xff] }
   0xe   :  { %58 = vmatpush.msra.mxu0 %v45_v6  ;;  %293 = vmatpush.msra.mxu3 %v45_v6  ;;  %v143_v40 = vld [vmem:[%s511_s4 + $0x10] sm:$0xff]  ;;  %v142_v41 = vld [vmem:[%s511_s4 + $0x8] sm:$0xff]  ;;  %v141_v42 = vld [vmem:[%s511_s4] sm:$0xff] }
   0xf   :  { %163 = vmatpush.msra.mxu1 %v144_v39  ;;  %v305_v57 = vld [vmem:[%s509_s2] ss:$0 sm:$0xff] }
  0x10   :  { %59 = vmatpush.msra.mxu0 %v44_v7  ;;  %294 = vmatpush.msra.mxu3 %v44_v7  ;;  %v310_v23 = vpop.eup %309  ;;  %v306_v61 = vld [vmem:[%s510_s3] ss:$0 sm:$0xff] }
  0x11   :  { %v85_v24 = vmul.f32 32.0, %v310_v23  ;;  %vm89_vm1 = vweird.f32 %v310_v23  ;;  %164 = vmatpush.msra.mxu1 %v143_v40 }
  0x12   :  { %60 = vmatpush.msra.mxu0 %v43_v8  ;;  %295 = vmatpush.msra.mxu3 %v43_v8 }
  0x13   :  { %v86_v25 = vsub.f32 1.0, %v85_v24  ;;  %165 = vmatpush.msra.mxu1 %v142_v41  ;;  %v308_v41 = vld [vmem:[%s513_s6] ss:$0 sm:$0xff] }
  0x14   :  { %61 = vmatpush.msra.mxu0 %v42_v9  ;;  %296 = vmatpush.msra.mxu3 %v42_v9 }
  0x15   :  { %v87_v26 = vmul.f32 %v310_v23, %v86_v25  ;;  %166 = vmatpush.msra.mxu1 %v141_v42 }
  0x16   :  { %62 = vmatpush.msra.mxu0 %v41_v10  ;;  %297 = vmatpush.msra.mxu3 %v41_v10 }
  0x17   :  { %v88_v27 = vadd.f32 %v310_v23, %v87_v26 }
  0x18   :  { %63 = vmatpush.msra.mxu0 %v40_v11  ;;  %298 = vmatpush.msra.mxu3 %v40_v11 }
  0x19   :  { %v453_v28 = vsel %vm89_vm1, %v310_v23, %v88_v27 }
  0x1a   :  { %64 = vmatpush.msra.mxu0 %v39_v12  ;;  %299 = vmatpush.msra.mxu3 %v39_v12 }
  0x1c   :  { %65 = vmatpush.msra.mxu0 %v38_v13  ;;  %300 = vmatpush.msra.mxu3 %v38_v13 }
  0x1e   :  { %66 = vmatpush.msra.mxu0 %v37_v14  ;;  %301 = vmatpush.msra.mxu3 %v37_v14 }
  0x20   :  { %67 = vmatpush.msra.mxu0 %v36_v15  ;;  %302 = vmatpush.msra.mxu3 %v36_v15 }
  0x21   :  { %68 = vmatmul.f32.vlgmr.msra.gmra.mxu0 %v34_v16  ;;  %71 = vmatmul.f32.vlgmr.msra.gmra.mxu3 %v35_v17 }
  0x9e   :  { %v69_v18 = vpop.f32.mrf.mxu0 }
  0x9f   :  { %v78_v19 = vsel %vm77_vm0, %v69_v18, 0.0 }
  0xa0   :  { %79 = vadd.xlane.f32.xlu0 %v78_v19 }
  0xa4   :  { %v72_v20 = vpop.f32.mrf.mxu3 }
  0xa5   :  { %v81_v21 = vsel %vm77_vm0, %v72_v20, 0.0 }
  0xa8   :  { %82 = vadd.xlane.f32.xlu0 %v81_v21 }
 0x113   :  { %v80_v29 = vpop.xlane.xlu0 %79 }
 0x114   :  { %v91_v30 = vmul.f32 %v453_v28, %v80_v29 }
 0x116   :  { %v93_v31 = vsub.f32 %v69_v18, %v91_v30 }
 0x118   :  { %v95_v32 = vmul.f32 %v93_v31, %v93_v31 }
 0x11a   :  { %v97_v33 = vsel %vm77_vm0, %v95_v32, 0.0 }
 0x11b   :  { %98 = vadd.xlane.f32.xlu1 %v97_v33  ;;  %v83_v34 = vpop.xlane.xlu0 %82 }
 0x11c   :  { %v92_v35 = vmul.f32 %v453_v28, %v83_v34 }
 0x11e   :  { %v94_v36 = vsub.f32 %v72_v20, %v92_v35 }
 0x120   :  { %v96_v37 = vmul.f32 %v94_v36, %v94_v36 }
 0x122   :  { %v100_v38 = vsel %vm77_vm0, %v96_v37, 0.0 }
 0x123   :  { %101 = vadd.xlane.f32.xlu1 %v100_v38  ;;  %v307_v38 = vld [vmem:[%s512_s5] ss:$0 sm:$0xff] }
 0x18e   :  { %v99_v43 = vpop.xlane.xlu1 %98 }
 0x18f   :  { %v103_v44 = vmul.f32 %v99_v43, %v453_v28 }
 0x191   :  { %v105_v45 = vadd.f32 1e-05, %v103_v44 }
 0x193   :  { %311 = vrsqrt.f32 %v105_v45  ;;  %vm113_vm3 = vweird.f32 %v105_v45 }
 0x196   :  { %v102_v46 = vpop.xlane.xlu1 %101 }
 0x197   :  { %v104_v47 = vmul.f32 %v102_v46, %v453_v28 }
 0x199   :  { %v312_v48 = vpop.eup %311  ;;  %v106_v49 = vadd.f32 1e-05, %v104_v47 }
 0x19a   :  { %v108_v50 = vmul.f32 %v312_v48, %v105_v45  ;;  %vm114_vm2 = vweird.f32 %v312_v48 }
 0x19b   :  { %313 = vrsqrt.f32 %v106_v49  ;;  %vm115_vm4 = vmor %vm113_vm3, %vm114_vm2  ;;  %vm123_vm6 = vweird.f32 %v106_v49 }
 0x19c   :  { %v109_v51 = vmul.f32 %v312_v48, %v108_v50 }
 0x19e   :  { %v110_v52 = vmul.f32 0.5, %v109_v51 }
 0x1a0   :  { %v111_v53 = vsub.f32 1.5, %v110_v52 }
 0x1a1   :  { %v314_v54 = vpop.eup %313 }
 0x1a2   :  { %v112_v55 = vmul.f32 %v312_v48, %v111_v53  ;;  %v118_v56 = vmul.f32 %v314_v54, %v106_v49  ;;  %vm124_vm5 = vweird.f32 %v314_v54  ;;  %v232_v53 = vld [vmem:[%s514_s7] sm:$0x1] }
 0x1a3   :  { %vm125_vm7 = vmor %vm123_vm6, %vm124_vm5 }
 0x1a4   :  { %v116_v58 = vsel %vm115_vm4, %v312_v48, %v112_v55  ;;  %v119_v59 = vmul.f32 %v314_v54, %v118_v56 }
 0x1a5   :  { %v127_v60 = vmul.f32 %v116_v58, %v93_v31 }
 0x1a6   :  { %v120_v62 = vmul.f32 0.5, %v119_v59 }
 0x1a7   :  { %v132_v63 = vmul.f32 %v305_v57, %v127_v60 }
 0x1a8   :  { %v121_v0 = vsub.f32 1.5, %v120_v62 }
 0x1a9   :  { %v137_v1 = vadd.f32 %v306_v61, %v132_v63 }
 0x1aa   :  { %v122_v2 = vmul.f32 %v314_v54, %v121_v0 }
 0x1ab   :  { %v139_v3 = vmax.f32 %v137_v1, 0.0 }
 0x1ac   :  { %v126_v4 = vsel %vm125_vm7, %v314_v54, %v122_v2  ;;  %v234_v54 = vstv %s515_s8 }
 0x1ad   :  { %282 = vmatmul.msk.f32.vlgmr.msra.gmra.mxu1 %vm77_vm0, %v139_v3  ;;  %v128_v5 = vmul.f32 %v126_v4, %v94_v36 }
 0x1af   :  { %v133_v6 = vmul.f32 %v305_v57, %v128_v5 }
 0x1b1   :  { %v138_v7 = vadd.f32 %v306_v61, %v133_v6 }
 0x1b3   :  { %v140_v8 = vmax.f32 %v138_v7, 0.0 }
 0x1b5   :  { %283 = vmatmul.msk.f32.gmra.mxu1 %vm77_vm0, %v140_v8 }
 0x22a   :  { %v168_v9 = vpop.f32.mrf.mxu1 }
 0x22b   :  { %v176_v12 = vsel %vm77_vm0, %v168_v9, 0.0 }
 0x232   :  { %v171_v10 = vpop.f32.mrf.mxu1 }
 0x233   :  { %v179_v11 = vsel %vm77_vm0, %v171_v10, 0.0 }
 0x234   :  { %180 = vadd.xlane.f32.xlu2 %v179_v11 }
 0x23c   :  { %177 = vadd.xlane.f32.xlu2 %v176_v12 }
 0x2a7   :  { %v181_v13 = vpop.xlane.xlu2 %180 }
 0x2a8   :  { %v183_v14 = vmul.f32 %v181_v13, %v453_v28 }
 0x2aa   :  { %v185_v15 = vsub.f32 %v171_v10, %v183_v14 }
 0x2ac   :  { %v187_v16 = vmul.f32 %v185_v15, %v185_v15 }
 0x2ae   :  { %v191_v17 = vsel %vm77_vm0, %v187_v16, 0.0 }
 0x2af   :  { %192 = vadd.xlane.f32.xlu0 %v191_v17  ;;  %v178_v18 = vpop.xlane.xlu2 %177 }
 0x2b0   :  { %v182_v19 = vmul.f32 %v178_v18, %v453_v28 }
 0x2b2   :  { %v184_v20 = vsub.f32 %v168_v9, %v182_v19 }
 0x2b4   :  { %v186_v21 = vmul.f32 %v184_v20, %v184_v20 }
 0x2b6   :  { %v188_v22 = vsel %vm77_vm0, %v186_v21, 0.0 }
 0x2b7   :  { %189 = vadd.xlane.f32.xlu1 %v188_v22 }
 0x322   :  { %v193_v23 = vpop.xlane.xlu0 %192 }
 0x323   :  { %v195_v24 = vmul.f32 %v193_v23, %v453_v28 }
 0x325   :  { %v197_v25 = vadd.f32 1e-05, %v195_v24 }
 0x327   :  { %315 = vrsqrt.f32 %v197_v25  ;;  %vm214_vm9 = vweird.f32 %v197_v25 }
 0x32a   :  { %v190_v26 = vpop.xlane.xlu1 %189 }
 0x32b   :  { %v194_v27 = vmul.f32 %v190_v26, %v453_v28 }
 0x32d   :  { %v316_v29 = vpop.eup %315  ;;  %v196_v30 = vadd.f32 1e-05, %v194_v27 }
 0x32e   :  { %v209_v31 = vmul.f32 %v316_v29, %v197_v25  ;;  %vm215_vm8 = vweird.f32 %v316_v29 }
 0x32f   :  { %317 = vrsqrt.f32 %v196_v30  ;;  %vm216_vm10 = vmor %vm214_vm9, %vm215_vm8  ;;  %vm204_vm12 = vweird.f32 %v196_v30 }
 0x330   :  { %v210_v32 = vmul.f32 %v316_v29, %v209_v31 }
 0x332   :  { %v211_v33 = vmul.f32 0.5, %v210_v32 }
 0x334   :  { %v212_v34 = vsub.f32 1.5, %v211_v33 }
 0x335   :  { %v318_v35 = vpop.eup %317 }
 0x336   :  { %v213_v36 = vmul.f32 %v316_v29, %v212_v34  ;;  %v199_v37 = vmul.f32 %v318_v35, %v196_v30  ;;  %vm205_vm11 = vweird.f32 %v318_v35 }
 0x337   :  { %vm206_vm13 = vmor %vm204_vm12, %vm205_vm11 }
 0x338   :  { %v200_v39 = vmul.f32 %v318_v35, %v199_v37  ;;  %v217_v40 = vsel %vm216_vm10, %v316_v29, %v213_v36 }
 0x339   :  { %v219_v28 = vmul.f32 %v217_v40, %v185_v15 }
 0x33a   :  { %v201_v42 = vmul.f32 0.5, %v200_v39 }
 0x33b   :  { %v224_v43 = vmul.f32 %v307_v38, %v219_v28 }
 0x33c   :  { %v202_v44 = vsub.f32 1.5, %v201_v42 }
 0x33d   :  { %v229_v45 = vadd.f32 %v308_v41, %v224_v43 }
 0x33e   :  { %v203_v46 = vmul.f32 %v318_v35, %v202_v44 }
 0x33f   :  { %v231_v47 = vmax.f32 %v229_v45, 0.0 }
 0x340   :  { %v207_v48 = vsel %vm206_vm13, %v318_v35, %v203_v46 }
 0x341   :  { %284 = vmatpush.xpose.msk.msra.mxu2 %vm77_vm0, %v231_v47  ;;  %v218_v49 = vmul.f32 %v207_v48, %v184_v20 }
 0x343   :  { %v223_v50 = vmul.f32 %v307_v38, %v218_v49 }
 0x345   :  { %v228_v51 = vadd.f32 %v308_v41, %v223_v50 }
 0x347   :  { %v230_v52 = vmax.f32 %v228_v51, 0.0 }
 0x349   :  { %285 = vmatpush.xpose.msk.msra.mxu2 %vm77_vm0, %v230_v52 }
 0x34c   :  { %286 = vmatmul.msk.f32.vlgmr.msra.gmra.mxu2 %vm77_vm0, %v232_v53 }
 0x3cf   :  { %v261_v55 = vpop.f32.mrf.mxu2 }
 0x3d0   :  { %v262_v56 = vadd.f32 %v261_v55, %v234_v54 }
 0x3d2   :  { %265 = vst.msk [vmem:[#allocation3] sm:$0x1] %vm264_vm14, %v262_v56 }
 0x3d3   :  { %276 = dma.vmem_to_hbm [thread:$0]  %s272_s17, 16, %s274_s20, [#allocation4]  }
 0x3d4   :  { %343 = dma.done.wait [#allocation4], 16  }
 0x3d5   :  { %344 = vsyncadd [#allocation4], 4294967280 }
 0x3d6   :  { %281 = vsyncpa [#allocation4], 1 }

</bundles_post_ra>
